<compile_context>
chip_gen: v5e
topology: v5e:2x2
jax: 0.10.0
libtpu: 0.0.40
codegen_flags: <defaults>
</compile_context>

<pallas_src>
import jax
import jax.numpy as jnp
from jax.experimental import pallas as pl
from jax.experimental.pallas import tpu as pltpu


def _round_up(x, m):
    return (x + m - 1) // m * m


def _largest_tile(dim, cap):
    """Largest multiple of 128 that divides dim and is <= cap (dim % 128 == 0)."""
    t = min(cap, dim)
    while dim % t != 0:
        t -= 128
    return t


def _glu_kernel(x_ref, w_ref, b_ref, o_ref, acc_ref):
    # x_ref:   (tm, tk)     row/reduction tile of the input (compute dtype)
    # w_ref:   (tk, 2*tn)   packed weight tile: [W1^T block (k,j) | W2^T block (k,j)]
    # b_ref:   (1, 2*tn)    packed bias tile:   [b1 block j       | b2 block j      ]
    # o_ref:   (tm, tn)     output tile (original dtype)
    # acc_ref: (tm, 2*tn)   f32 accumulator scratch
    k = pl.program_id(2)

    @pl.when(k == 0)
    def _():
        acc_ref[...] = jnp.zeros_like(acc_ref)

    # Single fused MXU dot per step (f32 accumulation regardless of input dtype).
    acc_ref[...] += jnp.dot(x_ref[...], w_ref[...],
                            preferred_element_type=jnp.float32)

    @pl.when(k == pl.num_programs(2) - 1)
    def _():
        tn = o_ref.shape[-1]
        y = acc_ref[...] + b_ref[...].astype(jnp.float32)
        out = y[:, :tn]          # lane-aligned static slices (tn multiple of 128)
        gate = y[:, tn:]
        o_ref[...] = (out * jax.nn.sigmoid(gate)).astype(o_ref.dtype)


def pack_glu_params(w1, b1, w2, b2, *, tn=None, compute_dtype=jnp.bfloat16):
    """One-time parameter prep (call at init, NOT per forward).

    w1, w2: (dim, dim) PyTorch-convention Linear weights; b1, b2: (dim,) biases.
    Returns (w_packed (dim, 2*dim), b_packed (1, 2*dim), tn) with columns
    interleaved per tn-wide block as [W1^T block j | W2^T block j], so a
    (tk, 2*tn) weight tile yields aligned out/gate halves in the kernel.
    """
    dim = w1.shape[0]
    assert dim % 128 == 0, "dim must be a multiple of 128 (pad weights otherwise)"
    if tn is None:
        tn = _largest_tile(dim, 512)
    assert tn % 128 == 0 and dim % tn == 0
    nb = dim // tn

    w1t = w1.T.reshape(dim, nb, tn)   # (in, blocks, tn)
    w2t = w2.T.reshape(dim, nb, tn)
    w_packed = jnp.concatenate([w1t, w2t], axis=-1).reshape(dim, 2 * dim)
    b_packed = jnp.concatenate(
        [b1.reshape(nb, tn), b2.reshape(nb, tn)], axis=-1
    ).reshape(1, 2 * dim).astype(jnp.float32)

    if compute_dtype is not None:
        w_packed = w_packed.astype(compute_dtype)
    # TODO(synk): optional int8 (v5e/v6e) / fp8 (v7x) weight path with per-block
    # scales folded into the epilogue for decode-style weight-bandwidth-bound shapes.
    return w_packed, b_packed, tn


def glu_pallas(x, w_packed, b_packed, tn, *, tm=512, tk=None,
               compute_dtype=jnp.bfloat16):
    """x: (..., dim); w_packed / b_packed / tn from pack_glu_params."""
    orig_dtype = x.dtype
    dim = x.shape[-1]
    lead = x.shape[:-1]
    x2d = x.reshape(-1, dim)
    M = x2d.shape[0]

    if compute_dtype is not None and x2d.dtype != compute_dtype:
        x2d = x2d.astype(compute_dtype)
    c_item = jnp.dtype(x2d.dtype).itemsize
    w_item = jnp.dtype(w_packed.dtype).itemsize
    o_item = jnp.dtype(orig_dtype).itemsize

    # Row tile: large for reuse of streamed weight bytes; rounded to the sublane
    # packing of the compute dtype (8 rows f32 / 16 bf16 / 32 int8-fp8 per vreg).
    sub = max(8, 32 // c_item)
    tm = max(sub, min(tm, _round_up(M, sub)))
    if tk is None:
        tk = _largest_tile(dim, 1024)
    assert tn % 128 == 0 and dim % tn == 0
    assert tk % 128 == 0 and dim % tk == 0

    n_i = pl.cdiv(M, tm)
    n_j = dim // tn
    n_k = dim // tk
    # j outermost: weight tile resident across the row sweep when n_k == 1.
    grid = (n_j, n_i, n_k)

    # Advisory cost estimate reflecting actual streamed traffic.
    w_stream = 1 if n_k == 1 else n_i                     # weight re-stream factor
    cost = pl.CostEstimate(
        flops=int(4 * M * dim * dim + 3 * M * dim),
        transcendentals=int(M * dim),
        bytes_accessed=int(n_j * M * dim * c_item          # x streamed per j
                           + w_stream * 2 * dim * dim * w_item
                           + n_i * 2 * dim * 4             # bias (f32)
                           + M * dim * o_item),            # output write
    )

    # Per-step VMEM: double-buffered x / w / bias / out tiles + single f32 acc.
    step_bytes = (2 * (tm * tk * c_item + tk * 2 * tn * w_item
                       + 2 * tn * 4 + tm * tn * o_item)
                  + tm * 2 * tn * 4)
    vmem_limit = None
    if step_bytes > 12 * 1024 * 1024:      # below v5e's 16 MiB default scoped limit
        vmem_limit = min(2 * step_bytes, 48 * 1024 * 1024)  # headroom on v7x (64 MiB)

    out2d = pl.pallas_call(
        _glu_kernel,
        out_shape=jax.ShapeDtypeStruct((M, dim), orig_dtype),
        grid_spec=pltpu.PrefetchScalarGridSpec(
            num_scalar_prefetch=0,
            grid=grid,
            in_specs=[
                pl.BlockSpec((tm, tk), lambda j, i, k: (i, k)),       # x (streams)
                pl.BlockSpec((tk, 2 * tn), lambda j, i, k: (k, j)),   # packed weights
                pl.BlockSpec((1, 2 * tn), lambda j, i, k: (0, j)),    # packed bias
            ],
            out_specs=pl.BlockSpec((tm, tn), lambda j, i, k: (i, j)),
            scratch_shapes=[pltpu.VMEM((tm, 2 * tn), jnp.float32)],
        ),
        compiler_params=pltpu.CompilerParams(
            dimension_semantics=("parallel", "parallel", "arbitrary"),
            vmem_limit_bytes=vmem_limit,
        ),
        cost_estimate=cost,
    )(x2d, w_packed, b_packed)

    return out2d.reshape(*lead, dim)


if __name__ == "__main__":
    key = jax.random.PRNGKey(0)
    kx, k1, k2, k3, k4 = jax.random.split(key, 5)

    # Small, lane-dense shapes consistent with the module: batch=2, seq=8, dim=128.
    batch, seq, dim = 2, 8, 128
    bound = 1.0 / (dim ** 0.5)
    x = jax.random.normal(kx, (batch, seq, dim), jnp.float32)
    w1 = jax.random.uniform(k1, (dim, dim), jnp.float32, -bound, bound)
    b1 = jax.random.uniform(k2, (dim,), jnp.float32, -bound, bound)
    w2 = jax.random.uniform(k3, (dim, dim), jnp.float32, -bound, bound)
    b2 = jax.random.uniform(k4, (dim,), jnp.float32, -bound, bound)

    # Hoisted one-time packing (transpose + block-interleave + bf16 cast).
    w_packed, b_packed, tn = pack_glu_params(w1, b1, w2, b2)

    y = glu_pallas(x, w_packed, b_packed, tn)
    y = jax.block_until_ready(y)

    # Reference 1: exact f32 semantics of the PyTorch module (loose tol: kernel
    # computes the matmuls in bf16 with f32 accumulation by design).
    ref_out_f32 = jnp.einsum("bsd,ed->bse", x, w1, precision="highest") + b1
    ref_gate_f32 = jnp.einsum("bsd,ed->bse", x, w2, precision="highest") + b2
    ref_f32 = ref_out_f32 * jax.nn.sigmoid(ref_gate_f32)

    # Reference 2: matches the kernel numerics (bf16 inputs, f32 accumulation).
    xb = x.astype(jnp.bfloat16)
    ref_out = jnp.einsum("bsd,ed->bse", xb, w1.astype(jnp.bfloat16),
                         preferred_element_type=jnp.float32) + b1
    ref_gate = jnp.einsum("bsd,ed->bse", xb, w2.astype(jnp.bfloat16),
                          preferred_element_type=jnp.float32) + b2
    ref_bf16 = ref_out * jax.nn.sigmoid(ref_gate)

    assert y.shape == x.shape
    assert jnp.allclose(y, ref_bf16, atol=1e-2, rtol=1e-2), "mismatch vs bf16 reference"
    assert jnp.allclose(y, ref_f32, atol=3e-2, rtol=3e-2), "mismatch vs f32 reference"
    print("KERNEL_OK")
</pallas_src>

<mosaic_0001>
module attributes {stable_mosaic.version = 11 : i64} {
  func.func @_glu_kernel(%arg0: i32, %arg1: i32, %arg2: i32, %arg3: memref<16x128xbf16, #tpu.memory_space<vmem>>, %arg4: memref<128x256xbf16, #tpu.memory_space<vmem>>, %arg5: memref<1x256xf32, #tpu.memory_space<vmem>>, %arg6: memref<16x128xf32, #tpu.memory_space<vmem>>, %arg7: memref<16x256xf32, #tpu.memory_space<vmem>>) attributes {dimension_semantics = [#tpu.dimension_semantics<parallel>, #tpu.dimension_semantics<parallel>, #tpu.dimension_semantics<arbitrary>], iteration_bounds = array<i64: 1, 1, 1>, scalar_prefetch = 0 : i64, scratch_operands = 1 : i64, tpu.core_type = #tpu.core_type<tc>, window_params = [{transform_indices = @transform_0, window_bounds = array<i64: 16, 128>}, {transform_indices = @transform_1, window_bounds = array<i64: 128, 256>}, {transform_indices = @transform_2, window_bounds = array<i64: 1, 256>}, {transform_indices = @transform_3, window_bounds = array<i64: 16, 128>}]} {
    %c0_i32 = arith.constant 0 : i32
    %0 = arith.cmpi eq, %arg2, %c0_i32 : i32
    %1 = arith.extui %0 : i1 to i32
    %c0_i32_0 = arith.constant 0 : i32
    %2 = arith.cmpi ne, %1, %c0_i32_0 : i32
    scf.if %2 {
      %cst_10 = arith.constant 0.000000e+00 : f32
      %12 = vector.broadcast %cst_10 : f32 to vector<16x256xf32>
      %c0_11 = arith.constant 0 : index
      %c0_12 = arith.constant 0 : index
      %13 = vector.load %arg7[%c0_11, %c0_12] : memref<16x256xf32, #tpu.memory_space<vmem>>, vector<16x256xf32>
      tpu.vector_store %arg7[%c0_11, %c0_12], %12 {strides = array<i32>} : memref<16x256xf32, #tpu.memory_space<vmem>>, vector<16x256xf32>,
    } else {
    }
    %c0 = arith.constant 0 : index
    %c0_1 = arith.constant 0 : index
    %3 = vector.load %arg7[%c0, %c0_1] : memref<16x256xf32, #tpu.memory_space<vmem>>, vector<16x256xf32>
    %c0_2 = arith.constant 0 : index
    %c0_3 = arith.constant 0 : index
    %4 = vector.load %arg3[%c0_2, %c0_3] : memref<16x128xbf16, #tpu.memory_space<vmem>>, vector<16x128xbf16>
    %c0_4 = arith.constant 0 : index
    %c0_5 = arith.constant 0 : index
    %5 = vector.load %arg4[%c0_4, %c0_5] : memref<128x256xbf16, #tpu.memory_space<vmem>>, vector<128x256xbf16>
    %cst = arith.constant dense<0.000000e+00> : vector<16x256xf32>
    %6 = tpu.matmul %4, %5, %cst {dimension_numbers = #tpu.dot_dimension_numbers<[1], [0], [0], [1], [0, 0, 1, 1], [], []>} : vector<16x128xbf16>, vector<128x256xbf16>, vector<16x256xf32> -> vector<16x256xf32>
    %7 = arith.addf %3, %6 : vector<16x256xf32>
    %c0_6 = arith.constant 0 : index
    %c0_7 = arith.constant 0 : index
    %8 = vector.load %arg7[%c0_6, %c0_7] : memref<16x256xf32, #tpu.memory_space<vmem>>, vector<16x256xf32>
    tpu.vector_store %arg7[%c0_6, %c0_7], %7 {strides = array<i32>} : memref<16x256xf32, #tpu.memory_space<vmem>>, vector<16x256xf32>,
    %c0_i32_8 = arith.constant 0 : i32
    %9 = arith.cmpi eq, %arg2, %c0_i32_8 : i32
    %10 = arith.extui %9 : i1 to i32
    %c0_i32_9 = arith.constant 0 : i32
    %11 = arith.cmpi ne, %10, %c0_i32_9 : i32
    scf.if %11 {
      %c0_10 = arith.constant 0 : index
      %c0_11 = arith.constant 0 : index
      %12 = vector.load %arg7[%c0_10, %c0_11] : memref<16x256xf32, #tpu.memory_space<vmem>>, vector<16x256xf32>
      %c0_12 = arith.constant 0 : index
      %c0_13 = arith.constant 0 : index
      %13 = vector.load %arg5[%c0_12, %c0_13] : memref<1x256xf32, #tpu.memory_space<vmem>>, vector<1x256xf32>
      %14 = vector.broadcast %13 : vector<1x256xf32> to vector<16x256xf32>
      %15 = arith.addf %12, %14 : vector<16x256xf32>
      %16 = vector.extract_strided_slice %15 {offsets = [0, 0], sizes = [16, 128], strides = [1, 1]} : vector<16x256xf32> to vector<16x128xf32>
      %17 = vector.extract_strided_slice %15 {offsets = [0, 128], sizes = [16, 128], strides = [1, 1]} : vector<16x256xf32> to vector<16x128xf32>
      %18 = arith.negf %17 : vector<16x128xf32>
      %19 = math.exp %18 : vector<16x128xf32>
      %cst_14 = arith.constant 1.000000e+00 : f32
      %20 = vector.broadcast %cst_14 : f32 to vector<16x128xf32>
      %21 = arith.addf %20, %19 : vector<16x128xf32>
      %22 = arith.divf %20, %21 : vector<16x128xf32>
      %23 = arith.mulf %16, %22 : vector<16x128xf32>
      %c0_15 = arith.constant 0 : index
      %c0_16 = arith.constant 0 : index
      %24 = vector.load %arg6[%c0_15, %c0_16] : memref<16x128xf32, #tpu.memory_space<vmem>>, vector<16x128xf32>
      tpu.vector_store %arg6[%c0_15, %c0_16], %23 {strides = array<i32>} : memref<16x128xf32, #tpu.memory_space<vmem>>, vector<16x128xf32>,
    } else {
    }
    return
  }
  func.func @transform_0(%arg0: i32, %arg1: i32, %arg2: i32) -> (i32, i32) {
    %c0_i32 = arith.constant 0 : i32
    return %arg1, %arg2 : i32, i32
  }
  func.func @transform_1(%arg0: i32, %arg1: i32, %arg2: i32) -> (i32, i32) {
    %c0_i32 = arith.constant 0 : i32
    return %arg2, %arg0 : i32, i32
  }
  func.func @transform_2(%arg0: i32, %arg1: i32, %arg2: i32) -> (i32, i32) {
    %c0_i32 = arith.constant 0 : i32
    %c0_i32_0 = arith.constant 0 : i32
    return %c0_i32, %arg0 : i32, i32
  }
  func.func @transform_3(%arg0: i32, %arg1: i32, %arg2: i32) -> (i32, i32) {
    %c0_i32 = arith.constant 0 : i32
    return %arg1, %arg0 : i32, i32
  }
}

</mosaic_0001>

<bundles_post_ra>
// kernel: tpu_custom_call.1
= control target key start
LH: loop header
LB: loop body
LE: loop exit
PB: predicated region body
PF: predicated region fallthrough
CT: control target
= control target key end

     0   :  { %8 = vsyncpa [#allocation4], 0  ;;  %s542_s0 = inlined_call_operand.hbm [shape: bf16[16,128], index: 0, kind: input, shape index: {}]   ;;  %s543_s1 = inlined_call_operand.hbm [shape: bf16[128,256], index: 1, kind: input, shape index: {}]   ;;  %s544_s2 = inlined_call_operand.hbm [shape: f32[1,256], index: 2, kind: input, shape index: {}]   ;;  %s545_s3 = inlined_call_operand.hbm [shape: f32[16,128], index: 3, kind: output, shape index: {}]  }
   0x1   :  { %9 = vsyncpa [#allocation7], 0  ;;  %s28_s14 = sshll.u32 %s543_s1, 4  ;;  %s29_s14 = int_to_ptr.hbm [resolvable:$true] %s28_s14 }
   0x2   :  { %10 = vsyncpa [#allocation5], 0  ;;  %s496_s15 = smov [#allocation6]   ;;  %s15_s19 = sshll.u32 %s542_s0, 4  ;;  %s16_s19 = int_to_ptr.hbm [resolvable:$true] %s15_s19 }
   0x3   :  { %s30_s16 = sshll.u32 %s496_s15, 4  ;;  %s497_s20 = smov 128   ;;  %s31_s16 = int_to_ptr.vmem [resolvable:$true] %s30_s16 }
   0x4   :  { %s498_s21 = smov 8   ;;  %s499_s22 = smov [#allocation3]  }
   0x5   :  { %36 = dma.hbm_to_vmem [thread:$0]  %s29_s14, 2048, %s31_s16, [#allocation7], %s497_s20, %s497_s20, %s498_s21  }
   0x6   :  { %s17_s23 = sshll.u32 %s499_s22, 4  ;;  %s500_s1 = smov 64   ;;  %s18_s23 = int_to_ptr.vmem [resolvable:$true] %s17_s23 }
   0x7   :  { %s501_s24 = smov 4   ;;  %s42_s27 = sshll.u32 %s544_s2, 4  ;;  %s43_s27 = int_to_ptr.hbm [resolvable:$true] %s42_s27 }
   0x8   :  { %23 = dma.hbm_to_vmem [thread:$0]  %s16_s19, 128, %s18_s23, [#allocation4], %s500_s1, %s500_s1, %s501_s24  }
   0x9   :  { %s502_s28 = smov [#allocation8]  }
   0xa   :  { %s44_s0 = sshll.u32 %s502_s28, 4  ;;  %s45_s0 = int_to_ptr.vmem [resolvable:$true] %s44_s0 }
   0xb   :  { %47 = dma.hbm_to_vmem [thread:$0]  %s43_s27, 32, %s45_s0, [#allocation7]  }
   0xc   :  { %490 = dma.done.wait [#allocation4], 128  }
   0xd   :  { %491 = vsyncadd [#allocation4], 4294967168 }
   0xe   :  { %492 = dma.done.wait [#allocation7], 2080  }
   0xf   :  { %493 = vsyncadd [#allocation7], 4294965216  ;;  %v376_v0 = vld [vmem:[#allocation6 + $0x74] sm:$0xf]  ;;  %v355_v1 = vld [vmem:[#allocation6 + $0x78] sm:$0xf0] }
  0x10   :  { %v374_v2 = vld [vmem:[#allocation6 + $0x64] sm:$0xf]  ;;  %v358_v3 = vor.u32 %v376_v0, %v355_v1  ;;  %v347_v4 = vld [vmem:[#allocation6 + $0x68] sm:$0xf0]  ;;  %v353_v6 = vld [vmem:[#allocation6 + $0x70] sm:$0xf] }
  0x11   :  { %v350_v5 = vor.u32 %v374_v2, %v347_v4  ;;  %v377_v7 = vld [vmem:[#allocation6 + $0x74] sm:$0xf0]  ;;  %v372_v8 = vld [vmem:[#allocation6 + $0x54] sm:$0xf]  ;;  %v339_v9 = vld [vmem:[#allocation6 + $0x58] sm:$0xf0] }
  0x12   :  { %190 = vmatpush.bf16.msra.mxu1 %v358_v3  ;;  %v354_v10 = vor.u32 %v377_v7, %v353_v6  ;;  %v345_v11 = vld [vmem:[#allocation6 + $0x60] sm:$0xf]  ;;  %v375_v12 = vld [vmem:[#allocation6 + $0x64] sm:$0xf0]  ;;  %v342_v14 = vor.u32 %v372_v8, %v339_v9  ;;  %v337_v15 = vld [vmem:[#allocation6 + $0x50] sm:$0xf] }
  0x13   :  { %v346_v13 = vor.u32 %v375_v12, %v345_v11  ;;  %v373_v16 = vld [vmem:[#allocation6 + $0x54] sm:$0xf0]  ;;  %v370_v17 = vld [vmem:[#allocation6 + $0x44] sm:$0xf]  ;;  %v331_v18 = vld [vmem:[#allocation6 + $0x48] sm:$0xf0] }
  0x14   :  { %176 = vmatpush.bf16.msra.mxu0 %v354_v10  ;;  %v338_v19 = vor.u32 %v373_v16, %v337_v15  ;;  %v334_v20 = vor.u32 %v370_v17, %v331_v18  ;;  %v329_v21 = vld [vmem:[#allocation6 + $0x40] sm:$0xf]  ;;  %v371_v22 = vld [vmem:[#allocation6 + $0x44] sm:$0xf0]  ;;  %v368_v23 = vld [vmem:[#allocation6 + $0x34] sm:$0xf] }
  0x15   :  { %v323_v24 = vld [vmem:[#allocation6 + $0x38] sm:$0xf0]  ;;  %v330_v25 = vor.u32 %v371_v22, %v329_v21  ;;  %v321_v27 = vld [vmem:[#allocation6 + $0x30] sm:$0xf]  ;;  %v369_v28 = vld [vmem:[#allocation6 + $0x34] sm:$0xf0] }
  0x16   :  { %191 = vmatpush.bf16.msra.mxu1 %v350_v5  ;;  %v326_v26 = vor.u32 %v368_v23, %v323_v24  ;;  %v366_v29 = vld [vmem:[#allocation6 + $0x24] sm:$0xf]  ;;  %v315_v30 = vld [vmem:[#allocation6 + $0x28] sm:$0xf0]  ;;  %v322_v31 = vor.u32 %v369_v28, %v321_v27  ;;  %v313_v33 = vld [vmem:[#allocation6 + $0x20] sm:$0xf] }
  0x17   :  { %v318_v32 = vor.u32 %v366_v29, %v315_v30  ;;  %v367_v34 = vld [vmem:[#allocation6 + $0x24] sm:$0xf0]  ;;  %v364_v35 = vld [vmem:[#allocation6 + $0x14] sm:$0xf]  ;;  %v307_v36 = vld [vmem:[#allocation6 + $0x18] sm:$0xf0] }
  0x18   :  { %177 = vmatpush.bf16.msra.mxu0 %v346_v13  ;;  %v314_v37 = vor.u32 %v367_v34, %v313_v33  ;;  %v310_v38 = vor.u32 %v364_v35, %v307_v36  ;;  %v305_v39 = vld [vmem:[#allocation6 + $0x10] sm:$0xf]  ;;  %v365_v40 = vld [vmem:[#allocation6 + $0x14] sm:$0xf0]  ;;  %v362_v41 = vld [vmem:[#allocation6 + $0x4] sm:$0xf] }
  0x19   :  { %v299_v42 = vld [vmem:[#allocation6 + $0x8] sm:$0xf0]  ;;  %v306_v43 = vor.u32 %v365_v40, %v305_v39  ;;  %v297_v45 = vld [vmem:[#allocation6] sm:$0xf]  ;;  %v363_v46 = vld [vmem:[#allocation6 + $0x4] sm:$0xf0] }
  0x1a   :  { %192 = vmatpush.bf16.msra.mxu1 %v342_v14  ;;  %v302_v44 = vor.u32 %v362_v41, %v299_v42  ;;  %v361_v47 = vld [vmem:[#allocation3] sm:$0xff]  ;;  %v298_v48 = vor.u32 %v363_v46, %v297_v45  ;;  %v219_v49 = vld [vmem:[#allocation8] sm:$0x3]  ;;  %s503_s2 = smov [#allocation9]   ;;  %s277_s5 = sshll.u32 %s545_s3, 4  ;;  %s278_s5 = int_to_ptr.hbm [resolvable:$true] %s277_s5 }
  0x1b   :  { %v222_v50 = vperm.slane %v219_v49, 1  ;;  %v221_v63 = vperm.slane %v219_v49, 0  ;;  %s275_s29 = sshll.u32 %s503_s2, 4  ;;  %s276_s29 = int_to_ptr.vmem [resolvable:$true] %s275_s29 }
  0x1c   :  { %178 = vmatpush.bf16.msra.mxu0 %v338_v19 }
  0x1e   :  { %193 = vmatpush.bf16.msra.mxu1 %v334_v20 }
  0x20   :  { %179 = vmatpush.bf16.msra.mxu0 %v330_v25 }
  0x22   :  { %194 = vmatpush.bf16.msra.mxu1 %v326_v26 }
  0x24   :  { %180 = vmatpush.bf16.msra.mxu0 %v322_v31 }
  0x26   :  { %195 = vmatpush.bf16.msra.mxu1 %v318_v32 }
  0x28   :  { %181 = vmatpush.bf16.msra.mxu0 %v314_v37 }
  0x2a   :  { %196 = vmatpush.bf16.msra.mxu1 %v310_v38 }
  0x2c   :  { %182 = vmatpush.bf16.msra.mxu0 %v306_v43 }
  0x2e   :  { %197 = vmatpush.bf16.msra.mxu1 %v302_v44 }
  0x30   :  { %183 = vmatpush.bf16.msra.mxu0 %v298_v48 }
  0x31   :  { %198 = vmatmul.bf16.vlgmr.msra.gmra.mxu1 %v361_v47 }
  0x33   :  { %184 = vmatmul.bf16.vlgmr.msra.gmra.mxu0 %v361_v47 }
  0xae   :  { %v199_v51 = vpop.f32.mrf.mxu1 }
  0xaf   :  { %v226_v52 = vadd.f32 %v222_v50, %v199_v51 }
  0xb0   :  { %v185_v1 = vpop.f32.mrf.mxu0 }
  0xb1   :  { %v359_v53 = vmul.f32 -1.442695, %v226_v52  ;;  %v225_v5 = vadd.f32 %v221_v63, %v185_v1 }
  0xb3   :  { %386 = vpow2.f32 %v359_v53 }
  0xb6   :  { %v201_v54 = vpop.f32.mrf.mxu1 }
  0xb7   :  { %v228_v55 = vadd.f32 %v222_v50, %v201_v54 }
  0xb8   :  { %v187_v17 = vpop.f32.mrf.mxu0 }
  0xb9   :  { %v387_v56 = vpop.eup %386  ;;  %v360_v57 = vmul.f32 -1.442695, %v228_v55  ;;  %v227_v20 = vadd.f32 %v221_v63, %v187_v17 }
  0xba   :  { %v235_v58 = vadd.f32 1.0, %v387_v56 }
  0xbb   :  { %388 = vpow2.f32 %v360_v57 }
  0xbc   :  { %390 = vrcp.f32 %v235_v58  ;;  %v248_v2 = vand.u32 2147483648, %v235_v58  ;;  %v246_v4 = vand.u32 2147483647, %v235_v58  ;;  %vm242_vm1 = vweird.f32 %v235_v58 }
  0xbe   :  { %v249_v8 = vor.u32 1.1754944e-38, %v248_v2  ;;  %vm247_vm3 = vcmp.eq.f32.partialorder %v246_v4, 8.507059e+37 }
  0xc1   :  { %v389_v59 = vpop.eup %388 }
  0xc2   :  { %v391_v60 = vpop.eup %390  ;;  %v236_v61 = vadd.f32 1.0, %v389_v59 }
  0xc3   :  { %v238_v62 = vmul.f32 %v391_v60, %v235_v58  ;;  %vm243_vm0 = vweird.f32 %v391_v60 }
  0xc4   :  { %392 = vrcp.f32 %v236_v61  ;;  %vm244_vm2 = vmor %vm242_vm1, %vm243_vm0  ;;  %v263_v14 = vand.u32 2147483648, %v236_v61  ;;  %v261_v16 = vand.u32 2147483647, %v236_v61  ;;  %vm257_vm5 = vweird.f32 %v236_v61 }
  0xc5   :  { %v239_v0 = vsub.f32 1.0, %v238_v62 }
  0xc6   :  { %v264_v19 = vor.u32 1.1754944e-38, %v263_v14  ;;  %vm262_vm7 = vcmp.eq.f32.partialorder %v261_v16, 8.507059e+37 }
  0xc7   :  { %v240_v3 = vmul.f32 %v391_v60, %v239_v0 }
  0xc9   :  { %v241_v6 = vadd.f32 %v391_v60, %v240_v3 }
  0xca   :  { %v393_v7 = vpop.eup %392 }
  0xcb   :  { %v245_v9 = vsel %vm244_vm2, %v391_v60, %v241_v6  ;;  %v253_v10 = vmul.f32 %v393_v7, %v236_v61  ;;  %vm258_vm4 = vweird.f32 %v393_v7 }
  0xcc   :  { %v250_v11 = vsel %vm247_vm3, %v249_v8, %v245_v9  ;;  %vm259_vm6 = vmor %vm257_vm5, %vm258_vm4 }
  0xcd   :  { %v267_v12 = vmul.f32 %v250_v11, %v225_v5  ;;  %v254_v13 = vsub.f32 1.0, %v253_v10 }
  0xcf   :  { %269 = vst [vmem:[#allocation9] sm:$0xff] %v267_v12  ;;  %v255_v15 = vmul.f32 %v393_v7, %v254_v13 }
  0xd1   :  { %v256_v18 = vadd.f32 %v393_v7, %v255_v15 }
  0xd3   :  { %v260_v21 = vsel %vm259_vm6, %v393_v7, %v256_v18 }
  0xd4   :  { %v265_v22 = vsel %vm262_vm7, %v264_v19, %v260_v21 }
  0xd5   :  { %v268_v23 = vmul.f32 %v265_v22, %v227_v20 }
  0xd7   :  { %270 = vst [vmem:[#allocation9 + $0x8] sm:$0xff] %v268_v23 }
  0xd8   :  { %283 = dma.vmem_to_hbm [thread:$0]  %s276_s29, 256, %s278_s5, [#allocation5], %s497_s20, %s497_s20, %s498_s21  }
  0xd9   :  { %494 = dma.done.wait [#allocation5], 256  }
  0xda   :  { %495 = vsyncadd [#allocation5], 4294967040 }
  0xdb   :  { %288 = vsyncpa [#allocation4], 1 }
  0xdc   :  { %289 = vsyncpa [#allocation7], 1 }
  0xdd   :  { %290 = vsyncpa [#allocation5], 1 }

</bundles_post_ra>
